<compile_context>
chip_gen: v7x
topology: tpu7x:2x2x1
jax: 0.10.0
libtpu: 0.0.40
codegen_flags: <defaults>
</compile_context>

<pallas_src>
import jax
import jax.numpy as jnp
from jax.experimental import pallas as pl
from jax.experimental.pallas import tpu as pltpu


def _round_up(x, m):
    return ((x + m - 1) // m) * m


def _make_kernel(tk, xw_resident):
    """adj_ref: (tm, tk) | xw_ref: (k_pad, f_out_p) or (tk, f_out_p)
    out_ref: (tm, f_out_p) f32, resident across the k axis (accumulator)."""

    def kernel(adj_ref, xw_ref, out_ref):
        k = pl.program_id(1)

        @pl.when(k == 0)
        def _():
            out_ref[...] = jnp.zeros_like(out_ref)

        if xw_resident:
            start = pl.multiple_of(k * tk, 128)
            xw_blk = xw_ref[pl.ds(start, tk), :]
        else:
            xw_blk = xw_ref[...]

        out_ref[...] += jnp.dot(
            adj_ref[...], xw_blk, preferred_element_type=jnp.float32
        )

    return kernel


def _plan(n, f_out_p, mxu_bytes):
    """Pick (tm, tk, m_pad, k_pad, xw_resident) for an N x N adjacency."""
    n128 = _round_up(n, 128)

    # Row tile: large (amortize ~0.35us per-grid-step overhead) but keep >=2
    # row blocks when possible so v7x's two TensorCores both get work.
    tm = min(512, n128)
    if n128 >= 256:
        tm = min(tm, ((n128 // 2) // 128) * 128)

    # Contraction tile: largest 128-multiple <= 2048 with <~5% K zero-padding.
    tk = (min(2048, n128) // 128) * 128
    while tk > 128 and _round_up(n, tk) > n128 + max(128, n128 // 20):
        tk -= 128

    def footprint(tk_, resident_, k_pad_):
        adj_b = 2 * tm * tk_ * mxu_bytes                     # double-buffered
        xw_b = (2 * k_pad_ * f_out_p * mxu_bytes) if resident_ \
            else (2 * tk_ * f_out_p * mxu_bytes)
        out_b = 2 * tm * f_out_p * 4
        return adj_b + xw_b + out_b

    while True:
        k_pad = _round_up(n, tk)
        resident = k_pad * f_out_p * mxu_bytes <= 8 * 1024 * 1024
        if footprint(tk, resident, k_pad) <= 32 * 1024 * 1024 or tk <= 128:
            break
        tk -= 128

    m_pad = _round_up(n, tm)
    return tm, tk, m_pad, k_pad, resident


def graph_conv_layer(adj, in_feat, weight, *, mxu_dtype=jnp.bfloat16):
    N, N2 = adj.shape
    assert N == N2, "adjacency must be square"
    f_in, f_out = weight.shape
    assert in_feat.shape == (N, f_in)

    # ---- lane-dense f_out padding -------------------------------------------
    f_out_p = _round_up(f_out, 128)
    w = weight
    if f_out_p != f_out:
        w = jnp.pad(weight, ((0, 0), (0, f_out_p - f_out)))

    # ---- cheap projection first (matmul reorder), in f32 --------------------
    xw = jnp.dot(
        in_feat.astype(jnp.float32),
        w.astype(jnp.float32),
        preferred_element_type=jnp.float32,
    )  # (N, f_out_p)

    # ---- tiling / padding plan ----------------------------------------------
    mxu_bytes = jnp.dtype(mxu_dtype).itemsize
    tm, tk, m_pad, k_pad, xw_resident = _plan(N, f_out_p, mxu_bytes)

    adj_p = adj
    if (m_pad, k_pad) != (N, N):
        adj_p = jnp.pad(adj, ((0, m_pad - N), (0, k_pad - N)))
    adj_p = adj_p.astype(mxu_dtype)

    xw_p = xw if k_pad == N else jnp.pad(xw, ((0, k_pad - N), (0, 0)))
    xw_p = xw_p.astype(mxu_dtype)

    grid = (m_pad // tm, k_pad // tk)

    if xw_resident:
        # Constant block index over the whole grid -> fetched once, stays in VMEM.
        xw_spec = pl.BlockSpec((k_pad, f_out_p), lambda i, k: (0, 0))
    else:
        xw_spec = pl.BlockSpec((tk, f_out_p), lambda i, k: (k, 0))

    out_p = pl.pallas_call(
        _make_kernel(tk, xw_resident),
        out_shape=jax.ShapeDtypeStruct((m_pad, f_out_p), jnp.float32),
        grid_spec=pltpu.PrefetchScalarGridSpec(
            num_scalar_prefetch=0,
            grid=grid,
            in_specs=[
                pl.BlockSpec((tm, tk), lambda i, k: (i, k)),   # adj tile
                xw_spec,                                       # xw (resident or tiled)
            ],
            out_specs=pl.BlockSpec((tm, f_out_p), lambda i, k: (i, 0)),
        ),
        compiler_params=pltpu.CompilerParams(
            dimension_semantics=("parallel", "arbitrary"),
            vmem_limit_bytes=40 * 1024 * 1024,  # headroom on v7x's 64 MiB VMEM
        ),
    )(adj_p, xw_p)

    out = out_p[:N, :f_out]
    return out.astype(in_feat.dtype)


def xavier_normal(key, in_feat, out_feat, dtype=jnp.float32):
    # torch.nn.init.xavier_normal_: std = sqrt(2 / (fan_in + fan_out))
    std = (2.0 / (in_feat + out_feat)) ** 0.5
    return (jax.random.normal(key, (in_feat, out_feat)) * std).astype(dtype)


if __name__ == "__main__":
    key = jax.random.PRNGKey(0)
    k_adj, k_feat, k_w = jax.random.split(key, 3)

    N, F_IN, F_OUT = 128, 64, 32  # small graph: 128 nodes, 64 -> 32 features

    adj = jax.random.uniform(k_adj, (N, N), dtype=jnp.float32)
    in_feat = jax.random.normal(k_feat, (N, F_IN), dtype=jnp.float32)
    weight = xavier_normal(k_w, F_IN, F_OUT)

    out = graph_conv_layer(adj, in_feat, weight)
    out = jax.block_until_ready(out)

    # reference check (plain f32 JAX). Kernel feeds the MXU in bf16 with f32
    # accumulation, so use a bf16-appropriate relative tolerance.
    ref = (adj @ in_feat) @ weight
    assert out.shape == (N, F_OUT)
    rel_err = jnp.max(jnp.abs(out - ref)) / (jnp.max(jnp.abs(ref)) + 1e-6)
    assert rel_err < 2e-2, f"rel_err={rel_err}"

    print("KERNEL_OK")
</pallas_src>

<mosaic_0001>
module attributes {stable_mosaic.version = 11 : i64} {
  func.func @kernel(%arg0: i32, %arg1: i32, %arg2: memref<128x128xbf16, #tpu.memory_space<vmem>>, %arg3: memref<128x128xbf16, #tpu.memory_space<vmem>>, %arg4: memref<128x128xf32, #tpu.memory_space<vmem>>) attributes {dimension_semantics = [#tpu.dimension_semantics<parallel>, #tpu.dimension_semantics<arbitrary>], iteration_bounds = array<i64: 1, 1>, scalar_prefetch = 0 : i64, scratch_operands = 0 : i64, tpu.core_type = #tpu.core_type<tc>, window_params = [{transform_indices = @transform_0, window_bounds = array<i64: 128, 128>}, {pipeline_mode = #tpu.pipeline_mode<synchronous>, transform_indices = @transform_1, window_bounds = array<i64: 128, 128>}, {transform_indices = @transform_2, window_bounds = array<i64: 128, 128>}]} {
    %c0_i32 = arith.constant 0 : i32
    %0 = arith.cmpi eq, %arg1, %c0_i32 : i32
    %1 = arith.extui %0 : i1 to i32
    %c0_i32_0 = arith.constant 0 : i32
    %2 = arith.cmpi ne, %1, %c0_i32_0 : i32
    scf.if %2 {
      %cst_7 = arith.constant 0.000000e+00 : f32
      %12 = vector.broadcast %cst_7 : f32 to vector<128x128xf32>
      %c0_8 = arith.constant 0 : index
      %c0_9 = arith.constant 0 : index
      %13 = vector.load %arg4[%c0_8, %c0_9] : memref<128x128xf32, #tpu.memory_space<vmem>>, vector<128x128xf32>
      tpu.vector_store %arg4[%c0_8, %c0_9], %12 {strides = array<i32>} : memref<128x128xf32, #tpu.memory_space<vmem>>, vector<128x128xf32>,
    } else {
    }
    %c128_i32 = arith.constant 128 : i32
    %3 = arith.muli %arg1, %c128_i32 : i32
    %4 = tpu.assume_multiple %3, 128 : i32
    %5 = arith.index_cast %4 : i32 to index
    %c0 = arith.constant 0 : index
    %6 = vector.load %arg3[%5, %c0] : memref<128x128xbf16, #tpu.memory_space<vmem>>, vector<128x128xbf16>
    %c0_1 = arith.constant 0 : index
    %c0_2 = arith.constant 0 : index
    %7 = vector.load %arg4[%c0_1, %c0_2] : memref<128x128xf32, #tpu.memory_space<vmem>>, vector<128x128xf32>
    %c0_3 = arith.constant 0 : index
    %c0_4 = arith.constant 0 : index
    %8 = vector.load %arg2[%c0_3, %c0_4] : memref<128x128xbf16, #tpu.memory_space<vmem>>, vector<128x128xbf16>
    %cst = arith.constant dense<0.000000e+00> : vector<128x128xf32>
    %9 = tpu.matmul %8, %6, %cst {dimension_numbers = #tpu.dot_dimension_numbers<[1], [0], [0], [1], [0, 0, 1, 1], [], []>} : vector<128x128xbf16>, vector<128x128xbf16>, vector<128x128xf32> -> vector<128x128xf32>
    %10 = arith.addf %7, %9 : vector<128x128xf32>
    %c0_5 = arith.constant 0 : index
    %c0_6 = arith.constant 0 : index
    %11 = vector.load %arg4[%c0_5, %c0_6] : memref<128x128xf32, #tpu.memory_space<vmem>>, vector<128x128xf32>
    tpu.vector_store %arg4[%c0_5, %c0_6], %10 {strides = array<i32>} : memref<128x128xf32, #tpu.memory_space<vmem>>, vector<128x128xf32>,
    return
  }
  func.func @transform_0(%arg0: i32, %arg1: i32) -> (i32, i32) {
    %c0_i32 = arith.constant 0 : i32
    return %arg0, %arg1 : i32, i32
  }
  func.func @transform_1(%arg0: i32, %arg1: i32) -> (i32, i32) {
    %c0_i32 = arith.constant 0 : i32
    %c0_i32_0 = arith.constant 0 : i32
    %c0_i32_1 = arith.constant 0 : i32
    return %c0_i32, %c0_i32_0 : i32, i32
  }
  func.func @transform_2(%arg0: i32, %arg1: i32) -> (i32, i32) {
    %c0_i32 = arith.constant 0 : i32
    %c0_i32_0 = arith.constant 0 : i32
    return %arg0, %c0_i32 : i32, i32
  }
}

</mosaic_0001>

<bundles_post_ra>
// kernel: tpu_custom_call.1
= control target key start
LH: loop header
LB: loop body
LE: loop exit
PB: predicated region body
PF: predicated region fallthrough
CT: control target
= control target key end

     0   :  { %7 = vsyncpa [#allocation3], 0  ;;  %s593_s0 = inlined_call_operand.hbm [shape: bf16[128,128], index: 0, kind: input, shape index: {}]   ;;  %s594_s1 = inlined_call_operand.hbm [shape: bf16[128,128], index: 1, kind: input, shape index: {}]   ;;  %s595_s2 = inlined_call_operand.hbm [shape: f32[128,128], index: 2, kind: output, shape index: {}]  }
   0x1   :  { %8 = vsyncpa [#allocation6], 0 }
   0x2   :  { %9 = vsyncpa [#allocation4], 0  ;;  %s535_s9 = smov [#allocation2]   ;;  %s463_s13 = scalar_lea.hbm %s593_s0, 1024 }
   0x3   :  { %s15_s10 = sshll.u32 %s535_s9, 4  ;;  %p464_p0 = scmp.ne.s32.totalorder %s593_s0, %s463_s13  ;;  %s16_s10 = int_to_ptr.vmem [resolvable:$true] %s15_s10 }
   0x4   :  { %p467_p1 = scmp.lt.u32.totalorder %s463_s13, %s593_s0 }
   0x6   :  { %p469_p2 = pnand %p467_p1, %p464_p0 }
   0x8   :  { %472 = shalt.err (!%p469_p2)
}
   0x9   :  { %s473_s18 = scalar_lea.vmem %s16_s10, 1024  ;;  %p478_p4 = scmp.lt.s32.totalorder %s16_s10, %s16_s10 }
   0xa   :  { %p474_p3 = scmp.ne.s32.totalorder %s16_s10, %s473_s18  ;;  %p479_p5 = scmp.lt.s32.totalorder %s473_s18, %s473_s18 }
   0xc   :  { %p480_p6 = por %p479_p5, %p478_p4 }
   0xe   :  { %p481_p7 = pnand %p480_p6, %p474_p3 }
  0x10   :  { %484 = shalt.err (!%p481_p7)
}
  0x11   :  { %s536_s19 = smov 64   ;;  %s537_s20 = smov 4  }
  0x12   :  { %21 = dma.hbm_to_vmem [thread:$0]  %s593_s0, 1024, %s16_s10, [#allocation3], %s536_s19, %s536_s19, %s537_s20  }
  0x13   :  { %s538_s23 = smov [#allocation5]   ;;  %s485_s27 = scalar_lea.hbm %s594_s1, 1024 }
  0x14   :  { %s27_s24 = sshll.u32 %s538_s23, 4  ;;  %p486_p8 = scmp.ne.s32.totalorder %s594_s1, %s485_s27  ;;  %s28_s24 = int_to_ptr.vmem [resolvable:$true] %s27_s24 }
  0x15   :  { %p489_p9 = scmp.lt.u32.totalorder %s485_s27, %s594_s1 }
  0x17   :  { %p491_p10 = pnand %p489_p9, %p486_p8 }
  0x19   :  { %494 = shalt.err (!%p491_p10)
}
  0x1a   :  { %s495_s4 = scalar_lea.vmem %s28_s24, 1024  ;;  %p500_p12 = scmp.lt.s32.totalorder %s28_s24, %s28_s24 }
  0x1b   :  { %p496_p11 = scmp.ne.s32.totalorder %s28_s24, %s495_s4  ;;  %p501_p13 = scmp.lt.s32.totalorder %s495_s4, %s495_s4 }
  0x1d   :  { %p502_p0 = por %p501_p13, %p500_p12 }
  0x1f   :  { %p503_p1 = pnand %p502_p0, %p496_p11 }
  0x21   :  { %506 = shalt.err (!%p503_p1)
}
  0x22   :  { %33 = dma.hbm_to_vmem [thread:$0]  %s594_s1, 1024, %s28_s24, [#allocation6], %s536_s19, %s536_s19, %s537_s20  }
  0x23   :  { %529 = dma.done.wait [#allocation3], 1024  }
  0x24   :  { %530 = vsyncadd [#allocation3], 4294966272 }
  0x25   :  { %531 = dma.done.wait [#allocation6], 1024  }
  0x26   :  { %532 = vsyncadd [#allocation6], 4294966272  ;;  %v447_v0 = vld [vmem:[#allocation5] sm:$0xff]   ;;  %v448_v1 = vld [vmem:[#allocation5 + $0x8] sm:$0xff]   ;;  %s539_s1 = smov [#allocation7]  }
  0x27   :  { %391 = vmatprep.subr.bf16.mxu0 %v447_v0  ;;  %423 = vmatprep.subr.bf16.mxu1 %v447_v0  ;;  %v449_v2 = vld [vmem:[#allocation5 + $0x10] sm:$0xff]   ;;  %v450_v3 = vld [vmem:[#allocation5 + $0x18] sm:$0xff]   ;;  %v455_v4 = vld [vmem:[#allocation2] sm:$0xff]   ;;  %s344_s6 = sshll.u32 %s539_s1, 4  ;;  %s345_s6 = int_to_ptr.vmem [resolvable:$true] %s344_s6 }
  0x28   :  { %392 = vmatpush3.bf16.msra.mxu0 %v447_v0  ;;  %431 = vmatpush3.bf16.msra.mxu1 %v447_v0  ;;  %v456_v5 = vld [vmem:[#allocation2 + $0x20] sm:$0xff]   ;;  %v452_v7 = vld [vmem:[#allocation5 + $0x28] sm:$0xff]   ;;  %v453_v8 = vld [vmem:[#allocation5 + $0x30] sm:$0xff]   ;;  %s507_s7 = scalar_lea.vmem %s345_s6, 2048  ;;  %p512_p3 = scmp.lt.s32.totalorder %s345_s6, %s345_s6 }
  0x29   :  { %393 = vmatprep.subr.bf16.mxu0 %v448_v1  ;;  %424 = vmatprep.subr.bf16.mxu1 %v448_v1  ;;  %v451_v6 = vld [vmem:[#allocation5 + $0x20] sm:$0xff]   ;;  %v454_v9 = vld [vmem:[#allocation5 + $0x38] sm:$0xff]   ;;  %v457_v10 = vld [vmem:[#allocation2 + $0x8] sm:$0xff]   ;;  %p508_p2 = scmp.ne.s32.totalorder %s345_s6, %s507_s7  ;;  %p513_p4 = scmp.lt.s32.totalorder %s507_s7, %s507_s7 }
  0x2a   :  { %407 = vmatprep.mubr.bf16.mxu0 %v455_v4  ;;  %415 = vmatprep.mubr.bf16.mxu1 %v456_v5  ;;  %v458_v11 = vld [vmem:[#allocation2 + $0x28] sm:$0xff]   ;;  %v459_v12 = vld [vmem:[#allocation2 + $0x10] sm:$0xff]   ;;  %v461_v14 = vld [vmem:[#allocation2 + $0x18] sm:$0xff]  }
  0x2b   :  { %v460_v13 = vld [vmem:[#allocation2 + $0x30] sm:$0xff]   ;;  %v462_v15 = vld [vmem:[#allocation2 + $0x38] sm:$0xff]   ;;  %p514_p5 = por %p513_p4, %p512_p3 }
  0x2c   :  { %394 = vmatpush3.bf16.msra.mxu0 %v448_v1  ;;  %432 = vmatpush3.bf16.msra.mxu1 %v448_v1 }
  0x2d   :  { %395 = vmatprep.subr.bf16.mxu0 %v449_v2  ;;  %425 = vmatprep.subr.bf16.mxu1 %v449_v2  ;;  %p515_p6 = pnand %p514_p5, %p508_p2 }
  0x30   :  { %396 = vmatpush3.bf16.msra.mxu0 %v449_v2  ;;  %433 = vmatpush3.bf16.msra.mxu1 %v449_v2 }
  0x31   :  { %397 = vmatprep.subr.bf16.mxu0 %v450_v3  ;;  %426 = vmatprep.subr.bf16.mxu1 %v450_v3 }
  0x34   :  { %398 = vmatpush3.bf16.msra.mxu0 %v450_v3  ;;  %434 = vmatpush3.bf16.msra.mxu1 %v450_v3 }
  0x35   :  { %399 = vmatprep.subr.bf16.mxu0 %v451_v6  ;;  %427 = vmatprep.subr.bf16.mxu1 %v451_v6 }
  0x38   :  { %400 = vmatpush3.bf16.msra.mxu0 %v451_v6  ;;  %435 = vmatpush3.bf16.msra.mxu1 %v451_v6 }
  0x39   :  { %401 = vmatprep.subr.bf16.mxu0 %v452_v7  ;;  %428 = vmatprep.subr.bf16.mxu1 %v452_v7 }
  0x3c   :  { %402 = vmatpush3.bf16.msra.mxu0 %v452_v7  ;;  %436 = vmatpush3.bf16.msra.mxu1 %v452_v7 }
  0x3d   :  { %403 = vmatprep.subr.bf16.mxu0 %v453_v8  ;;  %429 = vmatprep.subr.bf16.mxu1 %v453_v8 }
  0x40   :  { %404 = vmatpush3.bf16.msra.mxu0 %v453_v8  ;;  %437 = vmatpush3.bf16.msra.mxu1 %v453_v8 }
  0x41   :  { %405 = vmatprep.subr.bf16.mxu0 %v454_v9  ;;  %430 = vmatprep.subr.bf16.mxu1 %v454_v9 }
  0x44   :  { %406 = vmatpush3.bf16.msra.mxu0 %v454_v9  ;;  %438 = vmatpush3.bf16.msra.mxu1 %v454_v9 }
  0x47   :  { %408 = vmatmul.mubr.bf16.vlgmr.msra.gmra.mrb[0].mxu0 %v457_v10  ;;  %416 = vmatmul.mubr.bf16.vlgmr.msra.gmra.mrb[0].mxu1 %v458_v11 }
  0x48   :  { %411 = vmatprep.mubr.bf16.mxu0 %v459_v12  ;;  %419 = vmatprep.mubr.bf16.mxu1 %v460_v13 }
  0x4f   :  { %412 = vmatmul.mubr.bf16.gmra.mrb[4].mxu0 %v461_v14  ;;  %420 = vmatmul.mubr.bf16.gmra.mrb[4].mxu1 %v462_v15 }
 0x11a   :  { %v409_v16 = vpop.f32.mrb[0].mxu0  ;;  %v417_v17 = vpop.f32.mrb[0].mxu1 }
 0x11b   :  { %v244_v18 = vpop.f32.mrb[1].mxu0  ;;  %v276_v19 = vpop.f32.mrb[1].mxu1  ;;  %325 = vst [vmem:[#allocation7 + $0x10] sm:$0xff] %v409_v16  ;;  %333 = vst [vmem:[#allocation7 + $0x50] sm:$0xff] %v417_v17 }
 0x11c   :  { %v410_v20 = vpop.f32.mrb[2].mxu0  ;;  %v418_v21 = vpop.f32.mrb[2].mxu1  ;;  %323 = vst [vmem:[#allocation7] sm:$0xff] %v244_v18  ;;  %331 = vst [vmem:[#allocation7 + $0x40] sm:$0xff] %v276_v19 }
 0x11d   :  { %v247_v22 = vpop.f32.mrb[3].mxu0  ;;  %v279_v23 = vpop.f32.mrb[3].mxu1  ;;  %326 = vst [vmem:[#allocation7 + $0x18] sm:$0xff] %v410_v20  ;;  %334 = vst [vmem:[#allocation7 + $0x58] sm:$0xff] %v418_v21 }
 0x11e   :  { %324 = vst [vmem:[#allocation7 + $0x8] sm:$0xff] %v247_v22  ;;  %332 = vst [vmem:[#allocation7 + $0x48] sm:$0xff] %v279_v23 }
 0x122   :  { %v413_v24 = vpop.f32.mrb[4].mxu0  ;;  %v421_v25 = vpop.f32.mrb[4].mxu1 }
 0x123   :  { %v260_v26 = vpop.f32.mrb[5].mxu0  ;;  %v292_v27 = vpop.f32.mrb[5].mxu1  ;;  %329 = vst [vmem:[#allocation7 + $0x30] sm:$0xff] %v413_v24  ;;  %337 = vst [vmem:[#allocation7 + $0x70] sm:$0xff] %v421_v25 }
 0x124   :  { %v414_v28 = vpop.f32.mrb[6].mxu0  ;;  %v422_v29 = vpop.f32.mrb[6].mxu1  ;;  %327 = vst [vmem:[#allocation7 + $0x20] sm:$0xff] %v260_v26  ;;  %335 = vst [vmem:[#allocation7 + $0x60] sm:$0xff] %v292_v27 }
 0x125   :  { %v263_v30 = vpop.f32.mrb[7].mxu0  ;;  %v295_v31 = vpop.f32.mrb[7].mxu1  ;;  %330 = vst [vmem:[#allocation7 + $0x38] sm:$0xff] %v414_v28  ;;  %338 = vst [vmem:[#allocation7 + $0x78] sm:$0xff] %v422_v29 }
 0x126   :  { %328 = vst [vmem:[#allocation7 + $0x28] sm:$0xff] %v263_v30  ;;  %336 = vst [vmem:[#allocation7 + $0x68] sm:$0xff] %v295_v31 }
 0x127   :  { %518 = shalt.err (!%p515_p6)
}
 0x128   :  { %s519_s10 = scalar_lea.hbm %s595_s2, 2048 }
 0x129   :  { %p520_p7 = scmp.ne.s32.totalorder %s595_s2, %s519_s10  ;;  %p523_p8 = scmp.lt.u32.totalorder %s519_s10, %s595_s2 }
 0x12b   :  { %p525_p9 = pnand %p523_p8, %p520_p7 }
 0x12d   :  { %528 = shalt.err (!%p525_p9)
}
 0x12e   :  { %s540_s15 = smov 128   ;;  %s541_s16 = smov 8  }
 0x12f   :  { %350 = dma.vmem_to_hbm [thread:$0]  %s345_s6, 2048, %s595_s2, [#allocation4], %s540_s15, %s540_s15, %s541_s16  }
 0x130   :  { %533 = dma.done.wait [#allocation4], 2048  }
 0x131   :  { %534 = vsyncadd [#allocation4], 4294965248 }
 0x132   :  { %354 = vsyncpa [#allocation3], 1 }
 0x133   :  { %355 = vsyncpa [#allocation6], 1 }
 0x134   :  { %356 = vsyncpa [#allocation4], 1 }

</bundles_post_ra>
